<compile_context>
chip_gen: v7x
topology: tpu7x:2x2x1
jax: 0.10.0
libtpu: 0.0.40
codegen_flags: <defaults>
</compile_context>

<pallas_src>
import functools
import math

import jax
import jax.numpy as jnp
from jax import lax
from jax.experimental import pallas as pl
from jax.experimental.pallas import tpu as pltpu

LANE = 128
_SUB = 8  # f32 sublane count; element count is padded to a multiple of _SUB*LANE


def _weighted_bce(x, y, m, boundary_weight):
    """Elementwise w * BCEWithLogits(x, y) in f32, matching the torch module."""
    per = jnp.maximum(x, 0.0) - x * y + jnp.log1p(jnp.exp(-jnp.abs(x)))
    bw = jnp.float32(boundary_weight)
    if m.dtype == jnp.bool_:
        # 0/1 mask -> weight is 1 or boundary_weight: one mul + one select.
        return jnp.where(m, bw * per, per)
    if jnp.issubdtype(m.dtype, jnp.floating):
        mf = m.astype(jnp.int32).astype(jnp.float32)  # trunc toward 0 == torch .long()
    else:
        mf = m.astype(jnp.float32)
    w = 1.0 - mf + mf * bw
    return w * per


def _block_partial(x_ref, y_ref, m_ref, *, boundary_weight, chunk_rows, num_chunks,
                   rows_valid):
    """Partial sum of one block, folded to an (8, LANE) f32 tile.

    rows_valid is None (block fully in-bounds, mask-free hot path) or a static int:
    rows >= rows_valid belong to the clipped last DMA (stale VMEM) and are sanitized
    to zero before the transcendentals, then dropped from the sum.
    """
    if rows_valid is not None:
        # Hoisted once (JAX does not CSE broadcasts inside the loop).
        row_in_chunk = lax.broadcasted_iota(jnp.int32, (chunk_rows, LANE), 0)

    def body(j, acc):
        r0 = pl.multiple_of(j * chunk_rows, chunk_rows)
        x = x_ref[pl.ds(r0, chunk_rows), :].astype(jnp.float32)
        y = y_ref[pl.ds(r0, chunk_rows), :].astype(jnp.float32)
        m = m_ref[pl.ds(r0, chunk_rows), :]
        if rows_valid is None:
            contrib = _weighted_bce(x, y, m, boundary_weight)
        else:
            valid = (row_in_chunk + j * chunk_rows) < rows_valid
            x = jnp.where(valid, x, 0.0)           # sanitize OOB rows before exp/log1p
            y = jnp.where(valid, y, 0.0)
            contrib = jnp.where(valid, _weighted_bce(x, y, m, boundary_weight), 0.0)
        # Fold (chunk_rows, LANE) -> (8, LANE): tile-aligned reshape, pure VPU adds
        # into a single-vreg accumulator. No XLU reduce, no scalar RMW.
        return acc + jnp.sum(contrib.reshape(chunk_rows // _SUB, _SUB, LANE), axis=0)

    acc0 = jnp.zeros((_SUB, LANE), jnp.float32)
    return lax.fori_loop(0, num_chunks, body, acc0)


def _bce_partial_kernel(x_ref, y_ref, m_ref, out_ref, *, boundary_weight,
                        chunk_rows, num_chunks, rows_in_last):
    if rows_in_last == 0:
        # Every block (including the last) is fully in-bounds: single mask-free path.
        out_ref[...] = _block_partial(
            x_ref, y_ref, m_ref, boundary_weight=boundary_weight,
            chunk_rows=chunk_rows, num_chunks=num_chunks, rows_valid=None)
    else:
        i = pl.program_id(0)
        last = pl.num_programs(0) - 1

        @pl.when(i < last)
        def _():
            out_ref[...] = _block_partial(
                x_ref, y_ref, m_ref, boundary_weight=boundary_weight,
                chunk_rows=chunk_rows, num_chunks=num_chunks, rows_valid=None)

        @pl.when(i == last)
        def _():
            out_ref[...] = _block_partial(
                x_ref, y_ref, m_ref, boundary_weight=boundary_weight,
                chunk_rows=chunk_rows, num_chunks=num_chunks, rows_valid=rows_in_last)


@functools.partial(jax.jit,
                   static_argnames=("boundary_weight", "block_rows", "chunk_rows"))
def bce_weighted_boundary_loss(inputs, targets, boundary_masks, boundary_weight,
                               block_rows: int = 8192, chunk_rows: int = 1024):
    """Pallas implementation of BCE_Weighted_Boundary_Loss.forward (mean over all elems).

    boundary_weight is a static (hyperparameter) arg; pass it via SMEM instead if it
    needs to vary at runtime without recompiling.
    """
    n_true = inputs.size
    pad = (-n_true) % (_SUB * LANE)  # pad only to an (8*128)-element multiple

    def to_rows(a):
        flat = a.reshape(-1)                  # free (bitcast) for contiguous arrays
        if pad:
            flat = jnp.pad(flat, (0, pad))    # only when misaligned; zeros corrected below
        return flat.reshape(-1, LANE)

    x2 = to_rows(inputs)            # native dtype streams (bf16 stays bf16)
    y2 = to_rows(targets)
    m2 = to_rows(boundary_masks)    # bool stays 1 B/elem in HBM -> no astype copy

    n_rows = x2.shape[0]            # multiple of 8 by construction
    br = min(block_rows, n_rows)    # both multiples of 8
    cr = min(chunk_rows, br)
    while br % cr:                  # trace-time search; keeps cr a multiple of 8
        cr -= _SUB
    num_blocks = pl.cdiv(n_rows, br)
    rows_in_last = n_rows % br      # 0 => no clipped block, no masking path emitted

    kernel = functools.partial(
        _bce_partial_kernel,
        boundary_weight=float(boundary_weight),
        chunk_rows=cr,
        num_chunks=br // cr,
        rows_in_last=rows_in_last,
    )

    # VMEM budget as a function of the block size: 2x (double-buffered) streams plus
    # chunk temporaries/headroom, clamped to 48 MiB so it is safe on v7x (64 MiB/TC)
    # while leaving room on v5e/v6e (128 MiB).
    stream_bytes = br * LANE * (x2.dtype.itemsize + y2.dtype.itemsize + m2.dtype.itemsize)
    vmem_limit = int(min(48 * 2**20, max(16 * 2**20, 2 * stream_bytes + 12 * 2**20)))

    partials = pl.pallas_call(
        kernel,
        out_shape=jax.ShapeDtypeStruct((num_blocks * _SUB, LANE), jnp.float32),
        grid_spec=pltpu.PrefetchScalarGridSpec(
            num_scalar_prefetch=0,
            grid=(num_blocks,),
            in_specs=[
                pl.BlockSpec((br, LANE), lambda i: (i, 0)),
                pl.BlockSpec((br, LANE), lambda i: (i, 0)),
                pl.BlockSpec((br, LANE), lambda i: (i, 0)),
            ],
            # Each parallel block owns a private lane-dense (8,128) partial tile:
            # race-free, shards across v7x's two TensorCores, neutral on v5e/v6e.
            out_specs=pl.BlockSpec((_SUB, LANE), lambda i: (i, 0)),
        ),
        compiler_params=pltpu.CompilerParams(
            dimension_semantics=("parallel",),
            vmem_limit_bytes=vmem_limit,
        ),
    )(x2, y2, m2)

    total = jnp.sum(partials)
    if pad:
        # Zero-padded elements have mask 0 (weight 1) and x = y = 0, so each contributes
        # exactly log(2) to the sum; subtract analytically instead of masking in-kernel.
        total = total - jnp.float32(pad * math.log(2.0))
    return total / jnp.float32(n_true)


def _reference_loss(inputs, targets, boundary_masks, boundary_weight):
    """Pure-JAX reference for validation."""
    m = boundary_masks.astype(jnp.float32)
    w = 1.0 - m + m * boundary_weight
    x = inputs.astype(jnp.float32)
    y = targets.astype(jnp.float32)
    per = jnp.maximum(x, 0.0) - x * y + jnp.log1p(jnp.exp(-jnp.abs(x)))
    return jnp.mean(w * per)


if __name__ == "__main__":
    boundary_weight = 0.3

    # Case 1: small aligned shape consistent with the module (logits/targets/masks).
    key = jax.random.PRNGKey(0)
    k1, k2, k3 = jax.random.split(key, 3)
    shape = (2, 4, 16, 16)
    inputs = jax.random.normal(k1, shape, dtype=jnp.float32)
    targets = (jax.random.uniform(k2, shape) > 0.5).astype(jnp.float32)
    boundary_masks = jax.random.uniform(k3, shape) > 0.8      # boolean boundary mask

    loss = bce_weighted_boundary_loss(inputs, targets, boundary_masks, boundary_weight)
    loss = jax.block_until_ready(loss)
    ref = _reference_loss(inputs, targets, boundary_masks, boundary_weight)
    assert jnp.allclose(loss, ref, rtol=1e-5, atol=1e-6), (loss, ref)

    # Case 2: ragged size + small block_rows exercises the zero-pad correction and the
    # pl.when-gated masked last block.
    k4, k5, k6 = jax.random.split(jax.random.PRNGKey(1), 3)
    shape2 = (2, 4, 50, 16)                                   # 6400 elems -> pad + clip
    inputs2 = jax.random.normal(k4, shape2, dtype=jnp.float32)
    targets2 = (jax.random.uniform(k5, shape2) > 0.5).astype(jnp.float32)
    masks2 = jax.random.uniform(k6, shape2) > 0.8
    loss2 = bce_weighted_boundary_loss(inputs2, targets2, masks2, boundary_weight,
                                       block_rows=16)
    loss2 = jax.block_until_ready(loss2)
    ref2 = _reference_loss(inputs2, targets2, masks2, boundary_weight)
    assert jnp.allclose(loss2, ref2, rtol=1e-5, atol=1e-6), (loss2, ref2)

    print("KERNEL_OK")
</pallas_src>

<mosaic_0001>
module attributes {stable_mosaic.version = 11 : i64} {
  func.func @_bce_partial_kernel(%arg0: i32, %arg1: memref<16x128xf32, #tpu.memory_space<vmem>>, %arg2: memref<16x128xf32, #tpu.memory_space<vmem>>, %arg3: memref<16x128xi32, #tpu.memory_space<vmem>>, %arg4: memref<8x128xf32, #tpu.memory_space<vmem>>) attributes {dimension_semantics = [#tpu.dimension_semantics<parallel>], iteration_bounds = array<i64: 1>, scalar_prefetch = 0 : i64, scratch_operands = 0 : i64, tpu.core_type = #tpu.core_type<tc>, window_params = [{transform_indices = @transform_0, window_bounds = array<i64: 16, 128>}, {transform_indices = @transform_1, window_bounds = array<i64: 16, 128>}, {transform_indices = @transform_2, window_bounds = array<i64: 16, 128>}, {transform_indices = @transform_3, window_bounds = array<i64: 8, 128>}]} {
    %cst = arith.constant 0.000000e+00 : f32
    %0 = vector.broadcast %cst : f32 to vector<8x128xf32>
    %c0_i32 = arith.constant 0 : i32
    %c16_i32 = arith.constant 16 : i32
    %1 = arith.muli %c0_i32, %c16_i32 : i32
    %2 = tpu.assume_multiple %1, 16 : i32
    %3 = arith.index_cast %2 : i32 to index
    %c0 = arith.constant 0 : index
    %4 = vector.load %arg1[%3, %c0] : memref<16x128xf32, #tpu.memory_space<vmem>>, vector<16x128xf32>
    %5 = arith.index_cast %2 : i32 to index
    %c0_0 = arith.constant 0 : index
    %6 = vector.load %arg2[%5, %c0_0] : memref<16x128xf32, #tpu.memory_space<vmem>>, vector<16x128xf32>
    %7 = arith.index_cast %2 : i32 to index
    %c0_1 = arith.constant 0 : index
    %8 = vector.load %arg3[%7, %c0_1] : memref<16x128xi32, #tpu.memory_space<vmem>>, vector<16x128xi32>
    %cst_2 = arith.constant dense<0> : vector<16x128xi32>
    %9 = arith.cmpi ne, %8, %cst_2 : vector<16x128xi32>
    %cst_3 = arith.constant 0.000000e+00 : f32
    %10 = vector.broadcast %cst_3 : f32 to vector<16x128xf32>
    %11 = arith.maximumf %4, %10 : vector<16x128xf32>
    %12 = arith.mulf %4, %6 : vector<16x128xf32>
    %13 = arith.subf %11, %12 : vector<16x128xf32>
    %14 = math.absf %4 : vector<16x128xf32>
    %cst_4 = arith.constant 0.000000e+00 : f32
    %15 = vector.broadcast %cst_4 : f32 to vector<16x128xf32>
    %16 = arith.subf %15, %14 : vector<16x128xf32>
    %17 = math.exp %16 : vector<16x128xf32>
    %18 = math.log1p %17 : vector<16x128xf32>
    %19 = arith.addf %13, %18 : vector<16x128xf32>
    %cst_5 = arith.constant 3.000000e-01 : f32
    %20 = vector.broadcast %cst_5 : f32 to vector<16x128xf32>
    %21 = arith.mulf %20, %19 : vector<16x128xf32>
    %22 = arith.select %9, %21, %19 : vector<16x128xi1>, vector<16x128xf32>
    %23 = vector.shape_cast %22 : vector<16x128xf32> to vector<2x8x128xf32>
    %cst_6 = arith.constant dense<0.000000e+00> : vector<8x128xf32>
    %24 = vector.multi_reduction <add>, %23, %cst_6 [0] : vector<2x8x128xf32> to vector<8x128xf32>
    %25 = arith.addf %0, %24 : vector<8x128xf32>
    %c1_i32 = arith.constant 1 : i32
    %c0_7 = arith.constant 0 : index
    %c0_8 = arith.constant 0 : index
    %26 = vector.load %arg4[%c0_7, %c0_8] : memref<8x128xf32, #tpu.memory_space<vmem>>, vector<8x128xf32>
    tpu.vector_store %arg4[%c0_7, %c0_8], %25 {strides = array<i32>} : memref<8x128xf32, #tpu.memory_space<vmem>>, vector<8x128xf32>,
    return
  }
  func.func @transform_0(%arg0: i32) -> (i32, i32) {
    %c0_i32 = arith.constant 0 : i32
    %c0_i32_0 = arith.constant 0 : i32
    return %arg0, %c0_i32 : i32, i32
  }
  func.func @transform_1(%arg0: i32) -> (i32, i32) {
    %c0_i32 = arith.constant 0 : i32
    %c0_i32_0 = arith.constant 0 : i32
    return %arg0, %c0_i32 : i32, i32
  }
  func.func @transform_2(%arg0: i32) -> (i32, i32) {
    %c0_i32 = arith.constant 0 : i32
    %c0_i32_0 = arith.constant 0 : i32
    return %arg0, %c0_i32 : i32, i32
  }
  func.func @transform_3(%arg0: i32) -> (i32, i32) {
    %c0_i32 = arith.constant 0 : i32
    %c0_i32_0 = arith.constant 0 : i32
    return %arg0, %c0_i32 : i32, i32
  }
}

</mosaic_0001>

<bundles_post_ra>
// kernel: bce_weighted_boundary_loss.1
= control target key start
LH: loop header
LB: loop body
LE: loop exit
PB: predicated region body
PF: predicated region fallthrough
CT: control target
= control target key end

     0   :  { %s116_s0 = inlined_call_operand.vmem [shape: f32[16,128], index: 0, kind: input, shape index: {}]   ;;  %s117_s1 = inlined_call_operand.vmem [shape: f32[16,128], index: 1, kind: input, shape index: {}]   ;;  %s118_s2 = inlined_call_operand.vmem [shape: s32[16,128], index: 2, kind: input, shape index: {}]   ;;  %s119_s3 = inlined_call_operand.vmem [shape: f32[8,128], index: 3, kind: output, shape index: {}]  }
   0x1   :  { %v14_v0 = vld [vmem:[%s116_s0] sm:$0xff]  ;;  %v15_v1 = vld [vmem:[%s116_s0 + $0x8] sm:$0xff] }
   0x2   :  { %v28_v2 = vand.u32 2147483647, %v14_v0  ;;  %v29_v3 = vand.u32 2147483647, %v15_v1  ;;  %v16_v14 = vld [vmem:[%s117_s1] sm:$0xff]  ;;  %v17_v15 = vld [vmem:[%s117_s1 + $0x8] sm:$0xff] }
   0x3   :  { %v22_v17 = vmax.f32 %v14_v0, 0.0  ;;  %v24_v18 = vmul.f32 %v16_v14, %v14_v0  ;;  %v23_v21 = vmax.f32 %v15_v1, 0.0  ;;  %v25_v22 = vmul.f32 %v17_v15, %v15_v1  ;;  %v18_v31 = vld [vmem:[%s118_s2] sm:$0xff]  ;;  %v19_v33 = vld [vmem:[%s118_s2 + $0x8] sm:$0xff] }
   0x4   :  { %v30_v4 = vsub.f32 0.0, %v28_v2  ;;  %v31_v5 = vsub.f32 0.0, %v29_v3  ;;  %vm20_vm2 = vcmp.ne.s32.totalorder %v18_v31, 0  ;;  %vm21_vm3 = vcmp.ne.s32.totalorder %v19_v33, 0 }
   0x5   :  { %v26_v26 = vsub.f32 %v22_v17, %v24_v18  ;;  %v27_v29 = vsub.f32 %v23_v21, %v25_v22 }
   0x6   :  { %v32_v6 = vmul.f32 1.442695, %v30_v4  ;;  %v34_v7 = vmul.f32 1.442695, %v31_v5 }
   0x8   :  { %67 = vpow2.f32 %v32_v6 }
   0x9   :  { %69 = vpow2.f32 %v34_v7 }
  0x12   :  { %v68_v8 = vpop.eup %67 }
  0x13   :  { %v70_v9 = vpop.eup %69  ;;  %v36_v10 = vadd.f32 1.0, %v68_v8  ;;  %v39_v12 = vmul.f32 -0.5, %v68_v8  ;;  %v42_v19 = vand.u32 2147483647, %v68_v8 }
  0x14   :  { %v45_v11 = vadd.f32 1.0, %v70_v9  ;;  %v48_v13 = vmul.f32 -0.5, %v70_v9  ;;  %v51_v23 = vand.u32 2147483647, %v70_v9 }
  0x15   :  { %71 = vlog2.f32 %v36_v10  ;;  %v40_v16 = vadd.f32 1.0, %v39_v12  ;;  %vm43_vm0 = vcmp.lt.f32.partialorder %v42_v19, 0.0004427343 }
  0x16   :  { %73 = vlog2.f32 %v45_v11  ;;  %v49_v20 = vadd.f32 1.0, %v48_v13  ;;  %vm52_vm1 = vcmp.lt.f32.partialorder %v51_v23, 0.0004427343 }
  0x17   :  { %v41_v24 = vmul.f32 %v68_v8, %v40_v16 }
  0x18   :  { %v50_v27 = vmul.f32 %v70_v9, %v49_v20 }
  0x1f   :  { %v72_v25 = vpop.eup %71 }
  0x20   :  { %v74_v28 = vpop.eup %73  ;;  %v38_v30 = vmul.f32 0.6931472, %v72_v25 }
  0x21   :  { %v47_v32 = vmul.f32 0.6931472, %v74_v28 }
  0x22   :  { %v44_v34 = vsel %vm43_vm0, %v41_v24, %v38_v30 }
  0x23   :  { %v53_v35 = vsel %vm52_vm1, %v50_v27, %v47_v32  ;;  %v54_v36 = vadd.f32 %v44_v34, %v26_v26 }
  0x24   :  { %v55_v37 = vadd.f32 %v53_v35, %v27_v29 }
  0x25   :  { %v56_v38 = vmul.f32 0.3, %v54_v36 }
  0x26   :  { %v57_v39 = vmul.f32 0.3, %v55_v37 }
  0x27   :  { %v58_v40 = vsel %vm20_vm2, %v56_v38, %v54_v36 }
  0x28   :  { %v59_v41 = vsel %vm21_vm3, %v57_v39, %v55_v37 }
  0x29   :  { %v60_v42 = vadd.f32 %v59_v41, %v58_v40 }
  0x2b   :  { %62 = vst [vmem:[%s119_s3] sm:$0xff] %v60_v42 }

</bundles_post_ra>
